<compile_context>
chip_gen: v7x
topology: tpu7x:2x2x1
jax: 0.10.0
libtpu: 0.0.40
codegen_flags: <defaults>
</compile_context>

<pallas_src>
import jax
import jax.numpy as jnp
from jax.experimental import pallas as pl
from jax.experimental.pallas import tpu as pltpu

_LANE = 128
_VMEM_BUDGET = 10 * 1024 * 1024  # per-step working-set target (double buffers included)


def _round_up(x, m):
    return (x + m - 1) // m * m


def _footprint_bytes(ti, tk, fin, fout, op_bytes):
    """Rough per-grid-step VMEM working set (double-buffered inputs/outputs)."""
    w = 2 * fin * fout * op_bytes          # resident weight (worst case: 2 buffers)
    adj = 2 * ti * tk * op_bytes
    txt = 2 * tk * fin * op_bytes
    out = 2 * ti * fout * 4                # f32 output / accumulator block
    hid = tk * fout * 4                    # in-kernel fused hidden tile (f32)
    den = _round_up(ti, 8) * _LANE * 4     # (ti, 1) f32 scratch, lane-padded
    return w + adj + txt + out + hid + den


def _plan_tiles(n, fin, fout, op_bytes, budget=_VMEM_BUDGET):
    """Pick (ti, tk, Np).  Full-extent blocks (no padding) when the graph fits."""
    if n <= 1024 and _footprint_bytes(n, n, fin, fout, op_bytes) <= budget:
        return n, n, n
    np_ = _round_up(n, _LANE)
    for t in (512, 256, 128):
        if np_ % t == 0 and _footprint_bytes(t, t, fin, fout, op_bytes) <= budget:
            return t, t, np_
    return 128, 128, np_  # see TODO(synk) above


# ---------------------------------------------------------------------------
# Fused kernel: out = (adj @ (text @ W)) / (rowsum(adj) + 1)
# ---------------------------------------------------------------------------
def _gcn_fused_kernel(adj_ref, text_ref, w_ref, out_ref, den_ref):
    # adj_ref : (1, ti, tk)   compute dtype
    # text_ref: (1, tk, Fin)  compute dtype
    # w_ref   : (Fin, Fout)   compute dtype, resident (constant index_map)
    # out_ref : (1, ti, Fout) f32 -- block index invariant over k => resident
    #           accumulator; no extra scratch copy.
    # den_ref : (ti, 1) f32 scratch -- running rowsum(adj).
    k = pl.program_id(2)

    @pl.when(k == 0)
    def _init():
        out_ref[...] = jnp.zeros_like(out_ref)
        den_ref[...] = jnp.zeros_like(den_ref)

    adj = adj_ref[0]                    # (ti, tk)
    txt = text_ref[0]                   # (tk, Fin)

    # Fused "Phase 1": hidden tile for this k block, never materialized in HBM.
    hid = jnp.dot(txt, w_ref[...], preferred_element_type=jnp.float32)

    # "Phase 2": accumulate adj @ hidden directly into the resident output block.
    out_ref[0] = out_ref[0] + jnp.dot(
        adj, hid.astype(adj.dtype), preferred_element_type=jnp.float32)

    # Running denominator rowsum(adj); the +1 is applied in the epilogue.
    den_ref[...] += jnp.sum(adj, axis=1, keepdims=True, dtype=jnp.float32)

    @pl.when(k == pl.num_programs(2) - 1)
    def _finalize():
        # Exact divide: runs once per (b, i) tile, so the approx EUP reciprocal
        # saved no cycles and only cost accuracy.
        out_ref[0] = out_ref[0] / (den_ref[...] + 1.0)


# ---------------------------------------------------------------------------
# Wrapper
# ---------------------------------------------------------------------------
def graph_cn_forward(text, adj, weight, bias=None, *, compute_dtype=jnp.bfloat16):
    """text: (B, N, Fin), adj: (B, N, N), weight: (Fin, Fout) -> (B, N, Fout) f32.

    compute_dtype: MXU operand dtype.  bf16 (default) = native MXU multiply with
    f32 accumulation and half the HBM traffic; jnp.float32 = exact torch
    `.float()` semantics.
    """
    B, N, Fin = text.shape
    fin_w, Fout = weight.shape
    assert fin_w == Fin, "weight in_features mismatch"

    op_bytes = jnp.dtype(compute_dtype).itemsize
    ti, tk, Np = _plan_tiles(N, Fin, Fout, op_bytes)

    # torch does text.float()/adj.float(); cast once to the MXU operand dtype.
    text_c = text.astype(compute_dtype)
    adj_c = adj.astype(compute_dtype)
    w_c = weight.astype(compute_dtype)

    if Np != N:
        # Zero padding: padded rows/cols change neither the rowsums nor the
        # matmuls; padded output rows are sliced off below.
        text_c = jnp.pad(text_c, ((0, 0), (0, Np - N), (0, 0)))
        adj_c = jnp.pad(adj_c, ((0, 0), (0, Np - N), (0, Np - N)))

    fp = _footprint_bytes(ti, tk, Fin, Fout, op_bytes)
    vmem_limit = int(max(32 * 1024 * 1024, min(2 * fp, 64 * 1024 * 1024)))

    n_i, n_k = Np // ti, Np // tk
    steps = B * n_i * n_k
    cost = pl.CostEstimate(
        flops=steps * (2 * tk * Fin * Fout + 2 * ti * tk * Fout),
        transcendentals=0,
        bytes_accessed=(B * Np * Np * op_bytes                # adj read once
                        + B * Np * Fin * op_bytes * n_i       # text re-read per i tile
                        + Fin * Fout * op_bytes                # resident weight
                        + B * Np * Fout * 4),                  # f32 output write
    )

    out = pl.pallas_call(
        _gcn_fused_kernel,
        out_shape=jax.ShapeDtypeStruct((B, Np, Fout), jnp.float32),
        grid_spec=pltpu.PrefetchScalarGridSpec(
            num_scalar_prefetch=0,
            grid=(B, n_i, n_k),                               # reduction axis last
            in_specs=[
                pl.BlockSpec((1, ti, tk), lambda b, i, k: (b, i, k)),
                pl.BlockSpec((1, tk, Fin), lambda b, i, k: (b, k, 0)),
                pl.BlockSpec((Fin, Fout), lambda b, i, k: (0, 0)),   # resident W
            ],
            out_specs=pl.BlockSpec((1, ti, Fout), lambda b, i, k: (b, i, 0)),
            scratch_shapes=[pltpu.VMEM((ti, 1), jnp.float32)],        # rowsum acc
        ),
        compiler_params=pltpu.CompilerParams(
            dimension_semantics=("parallel", "parallel", "arbitrary"),
            vmem_limit_bytes=vmem_limit,
        ),
        cost_estimate=cost,
    )(adj_c, text_c, w_c)

    if Np != N:
        out = out[:, :N, :]
    if bias is not None:
        # Tiny elementwise add; XLA fuses it with the kernel output consumer.
        out = out + bias.astype(jnp.float32)
    return out


def init_weight(key, in_features, out_features, gain=1.414):
    # torch.nn.init.xavier_uniform_: U(-a, a), a = gain * sqrt(6 / (fan_in + fan_out))
    bound = gain * (6.0 / (in_features + out_features)) ** 0.5
    return jax.random.uniform(
        key, (in_features, out_features), dtype=jnp.float32,
        minval=-bound, maxval=bound,
    )


if __name__ == "__main__":
    key = jax.random.PRNGKey(0)
    k_text, k_adj, k_w = jax.random.split(key, 3)

    B, N, Fin, Fout = 2, 8, 16, 32

    text = jax.random.normal(k_text, (B, N, Fin), dtype=jnp.float32)
    adj = jax.random.uniform(k_adj, (B, N, N), dtype=jnp.float32)  # soft edges
    weight = init_weight(k_w, Fin, Fout)

    # Exact f32 reference (same math as the PyTorch module).
    hidden_ref = jnp.einsum("bnf,fo->bno", text, weight,
                            precision=jax.lax.Precision.HIGHEST)
    denom = jnp.sum(adj, axis=2, keepdims=True) + 1.0
    ref = jnp.einsum("bnm,bmo->bno", adj, hidden_ref,
                     precision=jax.lax.Precision.HIGHEST) / denom

    # Default performance path: bf16 MXU operands, f32 accumulation.
    out_bf16 = jax.block_until_ready(jax.jit(graph_cn_forward)(text, adj, weight))
    assert out_bf16.shape == ref.shape
    assert jnp.allclose(out_bf16, ref, atol=2e-2, rtol=2e-2), "bf16 path mismatch"

    # Exact path: f32 operands end to end (torch .float() semantics).
    out_f32 = jax.block_until_ready(
        jax.jit(lambda t, a, w: graph_cn_forward(t, a, w, compute_dtype=jnp.float32))(
            text, adj, weight))
    assert jnp.allclose(out_f32, ref, atol=1e-4, rtol=1e-4), "f32 path mismatch"

    print("KERNEL_OK")
</pallas_src>

<mosaic_0001>
module attributes {stable_mosaic.version = 11 : i64} {
  func.func @_gcn_fused_kernel(%arg0: i32, %arg1: i32, %arg2: i32, %arg3: memref<1x8x8xbf16, #tpu.memory_space<vmem>>, %arg4: memref<1x8x16xbf16, #tpu.memory_space<vmem>>, %arg5: memref<16x32xbf16, #tpu.memory_space<vmem>>, %arg6: memref<1x8x32xf32, #tpu.memory_space<vmem>>, %arg7: memref<8x1xf32, #tpu.memory_space<vmem>>) attributes {dimension_semantics = [#tpu.dimension_semantics<parallel>, #tpu.dimension_semantics<parallel>, #tpu.dimension_semantics<arbitrary>], iteration_bounds = array<i64: 2, 1, 1>, scalar_prefetch = 0 : i64, scratch_operands = 1 : i64, tpu.core_type = #tpu.core_type<tc>, window_params = [{transform_indices = @transform_0, window_bounds = array<i64: 1, 8, 8>}, {transform_indices = @transform_1, window_bounds = array<i64: 1, 8, 16>}, {pipeline_mode = #tpu.pipeline_mode<synchronous>, transform_indices = @transform_2, window_bounds = array<i64: 16, 32>}, {transform_indices = @transform_3, window_bounds = array<i64: 1, 8, 32>}]} {
    %c0_i32 = arith.constant 0 : i32
    %0 = arith.cmpi eq, %arg2, %c0_i32 : i32
    %1 = arith.extui %0 : i1 to i32
    %c0_i32_0 = arith.constant 0 : i32
    %2 = arith.cmpi ne, %1, %c0_i32_0 : i32
    scf.if %2 {
      %cst_22 = arith.constant 0.000000e+00 : f32
      %26 = vector.broadcast %cst_22 : f32 to vector<1x8x32xf32>
      %c0_23 = arith.constant 0 : index
      %c0_24 = arith.constant 0 : index
      %c0_25 = arith.constant 0 : index
      %27 = vector.load %arg6[%c0_23, %c0_24, %c0_25] : memref<1x8x32xf32, #tpu.memory_space<vmem>>, vector<1x8x32xf32>
      tpu.vector_store %arg6[%c0_23, %c0_24, %c0_25], %26 {strides = array<i32>} : memref<1x8x32xf32, #tpu.memory_space<vmem>>, vector<1x8x32xf32>,
      %cst_26 = arith.constant 0.000000e+00 : f32
      %28 = vector.broadcast %cst_26 : f32 to vector<8x1xf32>
      %c0_27 = arith.constant 0 : index
      %c0_28 = arith.constant 0 : index
      %29 = vector.load %arg7[%c0_27, %c0_28] : memref<8x1xf32, #tpu.memory_space<vmem>>, vector<8x1xf32>
      tpu.vector_store %arg7[%c0_27, %c0_28], %28 {strides = array<i32>} : memref<8x1xf32, #tpu.memory_space<vmem>>, vector<8x1xf32>,
    } else {
    }
    %c0 = arith.constant 0 : index
    %c0_1 = arith.constant 0 : index
    %c0_2 = arith.constant 0 : index
    %3 = vector.load %arg3[%c0, %c0_1, %c0_2] : memref<1x8x8xbf16, #tpu.memory_space<vmem>>, vector<1x8x8xbf16>
    %4 = vector.shape_cast %3 : vector<1x8x8xbf16> to vector<8x8xbf16>
    %c0_3 = arith.constant 0 : index
    %c0_4 = arith.constant 0 : index
    %c0_5 = arith.constant 0 : index
    %5 = vector.load %arg4[%c0_3, %c0_4, %c0_5] : memref<1x8x16xbf16, #tpu.memory_space<vmem>>, vector<1x8x16xbf16>
    %6 = vector.shape_cast %5 : vector<1x8x16xbf16> to vector<8x16xbf16>
    %c0_6 = arith.constant 0 : index
    %c0_7 = arith.constant 0 : index
    %7 = vector.load %arg5[%c0_6, %c0_7] : memref<16x32xbf16, #tpu.memory_space<vmem>>, vector<16x32xbf16>
    %cst = arith.constant dense<0.000000e+00> : vector<8x32xf32>
    %8 = tpu.matmul %6, %7, %cst {dimension_numbers = #tpu.dot_dimension_numbers<[1], [0], [0], [1], [0, 0, 1, 1], [], []>} : vector<8x16xbf16>, vector<16x32xbf16>, vector<8x32xf32> -> vector<8x32xf32>
    %c0_8 = arith.constant 0 : index
    %c0_9 = arith.constant 0 : index
    %c0_10 = arith.constant 0 : index
    %9 = vector.load %arg6[%c0_8, %c0_9, %c0_10] : memref<1x8x32xf32, #tpu.memory_space<vmem>>, vector<1x8x32xf32>
    %10 = vector.shape_cast %9 : vector<1x8x32xf32> to vector<8x32xf32>
    %11 = arith.truncf %8 : vector<8x32xf32> to vector<8x32xbf16>
    %cst_11 = arith.constant dense<0.000000e+00> : vector<8x32xf32>
    %12 = tpu.matmul %4, %11, %cst_11 {dimension_numbers = #tpu.dot_dimension_numbers<[1], [0], [0], [1], [0, 0, 1, 1], [], []>} : vector<8x8xbf16>, vector<8x32xbf16>, vector<8x32xf32> -> vector<8x32xf32>
    %13 = arith.addf %10, %12 : vector<8x32xf32>
    %c0_12 = arith.constant 0 : index
    %c0_13 = arith.constant 0 : index
    %c0_14 = arith.constant 0 : index
    %14 = vector.load %arg6[%c0_12, %c0_13, %c0_14] : memref<1x8x32xf32, #tpu.memory_space<vmem>>, vector<1x8x32xf32>
    %15 = vector.shape_cast %14 : vector<1x8x32xf32> to vector<8x32xf32>
    %16 = vector.shape_cast %13 : vector<8x32xf32> to vector<1x8x32xf32>
    tpu.vector_store %arg6[%c0_12, %c0_13, %c0_14], %16 {strides = array<i32>} : memref<1x8x32xf32, #tpu.memory_space<vmem>>, vector<1x8x32xf32>,
    %c0_15 = arith.constant 0 : index
    %c0_16 = arith.constant 0 : index
    %17 = vector.load %arg7[%c0_15, %c0_16] : memref<8x1xf32, #tpu.memory_space<vmem>>, vector<8x1xf32>
    %18 = arith.extf %4 : vector<8x8xbf16> to vector<8x8xf32>
    %cst_17 = arith.constant dense<0.000000e+00> : vector<8xf32>
    %19 = vector.multi_reduction <add>, %18, %cst_17 [1] : vector<8x8xf32> to vector<8xf32>
    %20 = vector.shape_cast %19 : vector<8xf32> to vector<8x1xf32>
    %21 = arith.addf %17, %20 : vector<8x1xf32>
    %c0_18 = arith.constant 0 : index
    %c0_19 = arith.constant 0 : index
    %22 = vector.load %arg7[%c0_18, %c0_19] : memref<8x1xf32, #tpu.memory_space<vmem>>, vector<8x1xf32>
    tpu.vector_store %arg7[%c0_18, %c0_19], %21 {strides = array<i32>} : memref<8x1xf32, #tpu.memory_space<vmem>>, vector<8x1xf32>,
    %c0_i32_20 = arith.constant 0 : i32
    %23 = arith.cmpi eq, %arg2, %c0_i32_20 : i32
    %24 = arith.extui %23 : i1 to i32
    %c0_i32_21 = arith.constant 0 : i32
    %25 = arith.cmpi ne, %24, %c0_i32_21 : i32
    scf.if %25 {
      %c0_22 = arith.constant 0 : index
      %c0_23 = arith.constant 0 : index
      %c0_24 = arith.constant 0 : index
      %26 = vector.load %arg6[%c0_22, %c0_23, %c0_24] : memref<1x8x32xf32, #tpu.memory_space<vmem>>, vector<1x8x32xf32>
      %27 = vector.shape_cast %26 : vector<1x8x32xf32> to vector<8x32xf32>
      %c0_25 = arith.constant 0 : index
      %c0_26 = arith.constant 0 : index
      %28 = vector.load %arg7[%c0_25, %c0_26] : memref<8x1xf32, #tpu.memory_space<vmem>>, vector<8x1xf32>
      %cst_27 = arith.constant 1.000000e+00 : f32
      %29 = vector.broadcast %cst_27 : f32 to vector<8x1xf32>
      %30 = arith.addf %28, %29 : vector<8x1xf32>
      %31 = vector.broadcast %30 : vector<8x1xf32> to vector<8x32xf32>
      %32 = arith.divf %27, %31 : vector<8x32xf32>
      %c0_28 = arith.constant 0 : index
      %c0_29 = arith.constant 0 : index
      %c0_30 = arith.constant 0 : index
      %33 = vector.load %arg6[%c0_28, %c0_29, %c0_30] : memref<1x8x32xf32, #tpu.memory_space<vmem>>, vector<1x8x32xf32>
      %34 = vector.shape_cast %33 : vector<1x8x32xf32> to vector<8x32xf32>
      %35 = vector.shape_cast %32 : vector<8x32xf32> to vector<1x8x32xf32>
      tpu.vector_store %arg6[%c0_28, %c0_29, %c0_30], %35 {strides = array<i32>} : memref<1x8x32xf32, #tpu.memory_space<vmem>>, vector<1x8x32xf32>,
    } else {
    }
    return
  }
  func.func @transform_0(%arg0: i32, %arg1: i32, %arg2: i32) -> (i32, i32, i32) {
    %c0_i32 = arith.constant 0 : i32
    return %arg0, %arg1, %arg2 : i32, i32, i32
  }
  func.func @transform_1(%arg0: i32, %arg1: i32, %arg2: i32) -> (i32, i32, i32) {
    %c0_i32 = arith.constant 0 : i32
    %c0_i32_0 = arith.constant 0 : i32
    return %arg0, %arg2, %c0_i32 : i32, i32, i32
  }
  func.func @transform_2(%arg0: i32, %arg1: i32, %arg2: i32) -> (i32, i32) {
    %c0_i32 = arith.constant 0 : i32
    %c0_i32_0 = arith.constant 0 : i32
    %c0_i32_1 = arith.constant 0 : i32
    return %c0_i32, %c0_i32_0 : i32, i32
  }
  func.func @transform_3(%arg0: i32, %arg1: i32, %arg2: i32) -> (i32, i32, i32) {
    %c0_i32 = arith.constant 0 : i32
    %c0_i32_0 = arith.constant 0 : i32
    return %arg0, %arg1, %c0_i32 : i32, i32, i32
  }
}

</mosaic_0001>

<bundles_post_ra>
// kernel: graph_cn_forward.1
= control target key start
LH: loop header
LB: loop body
LE: loop exit
PB: predicated region body
PF: predicated region fallthrough
CT: control target
= control target key end

     0   :  { %8 = vsyncpa [#allocation4], 0  ;;  %s806_s0 = inlined_call_operand.vmem [shape: bf16[2,8,8], index: 0, kind: input, shape index: {}]   ;;  %s807_s1 = inlined_call_operand.vmem [shape: bf16[2,8,16], index: 1, kind: input, shape index: {}]   ;;  %s808_s2 = inlined_call_operand.vmem [shape: bf16[16,32], index: 2, kind: input, shape index: {}]   ;;  %s809_s3 = inlined_call_operand.hbm [shape: f32[2,8,32], index: 3, kind: output, shape index: {}]  }
   0x1   :  { %10 = vsyncpa [#allocation4 + $0x1], 0  ;;  %s679_s12 = smov 0   ;;  %s681_s13 = smov 0  }
   0x2   :  { %s683_s14 = smov 0   ;;  %s685_s15 = smov 0  }
   0x3   :  { %s687_s16 = smov 0   ;;  %s689_s17 = smov 0  }
   0x4 LB: > { %s482_s18 = sadd.s32 4294967295, %s653_s17   ;;  %s483_s19 = sadd.s32 4294967294, %s653_s17   ;;  %s653_s17 = sphi %s689_s17, %s16_s17   ;;  %s649_s16 = sphi %s687_s16, %s816_s16   ;;  %s645_s15 = sphi %s685_s15, %s815_s15   ;;  %s641_s14 = sphi %s683_s14, %s814_s14   ;;  %s637_s13 = sphi %s681_s13, %s813_s13   ;;  %s633_s12 = sphi %s679_s12, %s812_s12  }
   0x5   : > { %s35_s20 = sadd.s32 1, %s649_s16  ;;  %s123_s21 = sadd.s32 1, %s641_s14 }
   0x6   : > { %p37_p0 = scmp.ge.s32.totalorder %s35_s20, 2  ;;  %p133_p1 = scmp.ne.s32.totalorder %s641_s14, %s637_s13 }
   0x7   : > { %p134_p2 = scmp.eq.s32.totalorder %s482_s18, 1  ;;  %p139_p3 = scmp.ne.s32.totalorder %s637_s13, %s633_s12 }
   0x8   : > { %s818_s20 = smov (%p37_p0, %s35_s20), 0  ;;  %p140_p5 = scmp.eq.s32.totalorder %s483_s19, 1 }
   0x9   : > { %p719_p4 = por %p134_p2, %p133_p1  ;;  %s118_s23 = ssub.s32 %s649_s16, %s818_s20 }
   0xa   : > { %p486_p6 = scmp.ge.s32.totalorder %s653_s17, 1  ;;  %p121_p7 = scmp.eq.s32.totalorder %s118_s23, 0 }
   0xb   : > { %p726_p8 = por %p140_p5, %p139_p3  ;;  %p184_p9 = scmp.lt.s32.totalorder %s653_s17, 3 }
   0xc   : > { %s732_s25 = scalar_select %p121_p7, %s641_s14, %s123_s21  }
   0xd   : > { %p185_p10 = pnand %p486_p6, %p184_p9 }
   0xe   : > { %v572_v0 = vld [vmem:[%s808_s2] sm:$0xff] (!%p185_p10)   ;;  %v655_v1 = vmov (!%p185_p10), 0.0   ;;  %p220_p11 = scmp.lt.s32.totalorder (!%p185_p10), %s645_s15, 1  ;;  %vm656_vm0 = vmmov (!%p185_p10), 0   ;;  %vm256_vm1 = vcmask (!%p185_p10), 130048   ;;  %vm302_vm2 = vcmask (!%p185_p10), 64512  }
   0xf   : > { %188 = sbr.rel (%p185_p10) target bundleno = 483 (0x1e3), region = 32  ;;  %501 = vmatprep.subr.bf16.mxu0 (!%p185_p10), %v655_v1  ;;  %507 = vmatprep.subr.bf16.mxu1 (!%p185_p10), %v655_v1  ;;  %vm244_vm3 = vcmask (!%p185_p10), 7168   ;;  %v657_v6 = vmov (!%p185_p10), 0   ;;  %s217_s9 = sand.u32 (!%p185_p10), 1, %s637_s13   ;;  %vm242_vm4 = vcmask (!%p185_p10), 261120   ;;  %vm306_vm5 = vcmask (!%p185_p10), 1043456  }
  0x10   : > { %502 = vmatpush3.bf16.msra.mxu0 (!%p185_p10), %v572_v0  ;;  %503 = vmatprep.mubr.msk.bf16.mxu0 (!%p185_p10), %vm656_vm0, %v655_v1  ;;  %245 = vst.msk [vmem:[#allocation2] sm:$0xff] (!%p185_p10), %vm244_vm3, %v655_v1  ;;  %s487_s10 = sshll.u32 (!%p185_p10), %s217_s9, 3  ;;  %s494_s18 = sshll.u32 (!%p185_p10), %s645_s15, 7 }
  0x11   : > { %509 = vmatprep.mubr.msk.bf16.mxu1 (!%p185_p10), %vm656_vm0, %v655_v1  ;;  %571 = vset.pattern.permute.xlu0 (!%p185_p10), %v657_v6  ;;  %s219_s11 = scalar_lea.vmem (!%p185_p10), [#allocation3], %s487_s10  ;;  %s756_s26 = scalar_lea.hbm (!%p185_p10), %s809_s3, %s494_s18 }
  0x12   : > { %243 = vst.msk [vmem:[%s219_s11] sm:$0xff] (!%p185_p10), %vm242_vm4, %v655_v1  ;;  %s390_s19 = sshll.u32 (!%p185_p10), %s219_s11, 4  ;;  %s376_s27 = scalar_lea.sflag (!%p185_p10), [#allocation4], %s217_s9  ;;  %s758_s19 = int_to_ptr.vmem [resolvable:$true] %s390_s19 }
  0x16   : > { %s221_s28 = scalar_select %p220_p11, %s645_s15, 1 }
  0x17   : > { %v353_v7 = vld [vmem:[#allocation2] sm:$0xff]  ;;  %s658_s15 = smov [#allocation3]  }
  0x18   : > { %s488_s29 = sshll.u32 %s221_s28, 2  ;;  %s575_s28 = scalar_lea.vmem %s758_s19, 128 }
  0x19   : > { %s236_s5 = scalar_lea.vmem %s807_s1, %s488_s29  ;;  %s229_s8 = scalar_lea.vmem %s806_s0, %s488_s29  ;;  %v300_v19 = vld [vmem:[%s219_s11] sm:$0xff] }
  0x1a   : > { %v247_v2 = vld [vmem:[%s236_s5] sm:$0xf]  ;;  %p576_p12 = scmp.ne.s32.totalorder %s758_s19, %s575_s28  ;;  %s579_s29 = sshll.u32 %s658_s15, 4  ;;  %s580_s29 = int_to_ptr.vmem [resolvable:$false] %s579_s29 }
  0x1b   : > { %v246_v3 = vld [vmem:[%s229_s8] sm:$0xf]  ;;  %504 = vmatmul.mubr.msk.bf16.vlgmr.msra.gmra.mrb[0].mxu0 %vm256_vm1, %v247_v2  ;;  %s581_s30 = scalar_lea.vmem %s580_s29, 256  ;;  %p582_p1 = scmp.lt.s32.totalorder %s758_s19, %s580_s29 }
  0x1c   : > { %v354_v4 = vunpack.c.l.bf16 %v246_v3  ;;  %p577_p13 = pnand %p576_p12, %p719_p4  ;;  %p583_p2 = scmp.lt.s32.totalorder %s581_s30, %s575_s28 }
  0x1e   : > { %v355_v5 = vsel %vm302_vm2, %v354_v4, 0.0  ;;  %p578_p0 = pneg %p577_p13  ;;  %p584_p3 = por %p583_p2, %p582_p1 }
  0x1f   : > { %356 = vadd.xlane.f32.xlu0 %v355_v5 }
  0x20   : > { %p585_p5 = pnand %p584_p3, %p578_p0 }
  0xac   : > { %v357_v8 = vpop.xlane.xlu0 %356 }
  0xad   : > { %v358_v9 = vadd.f32 %v357_v8, %v353_v7 }
  0xaf   : > { %360 = vst.msk [vmem:[#allocation2] sm:$0xff] %vm244_vm3, %v358_v9 }
  0xb6   : > { %v365_v10 = vld [vmem:[#allocation2] sm:$0xff] }
  0xb7   : > { %v366_v11 = vadd.f32 1.0, %v365_v10 }
  0xb9   : > { %369 = vperm.xlu0 %571, %v366_v11  }
  0xee   : > { %v294_v12 = vpop.f32.mrb[0].mxu0 }
  0xef   : > { %v301_v13 = vpack.c.bf16 %v294_v12, %v294_v12  ;;  %v505_v14 = vpop.f32.mrb[1].mxu0 }
  0xf0   : > { %v297_v15 = vpop.f32.mrb[2].mxu0 }
  0xf1   : > { %v506_v16 = vpop.f32.mrb[3].mxu0  ;;  %v308_v17 = vsel %vm306_vm5, %v301_v13, 0 }
  0xf2   : > { %508 = vmatpush3.bf16.msra.mxu1 %v308_v17 }
  0xf5   : > { %510 = vmatmul.mubr.msk.bf16.vlgmr.msra.gmra.mrb[0].mxu1 %vm302_vm2, %v246_v3 }
 0x138   : > { %v370_v18 = vpop.permute.xlu0 %369 }
 0x139   : > { %573 = vrcp.f32 %v370_v18 }
 0x143   : > { %v574_v25 = vpop.eup %573 }
 0x1c8   : > { %v344_v20 = vpop.f32.mrb[0].mxu1 }
 0x1c9   : > { %v350_v21 = vadd.f32 %v344_v20, %v300_v19  ;;  %v511_v22 = vpop.f32.mrb[1].mxu1 }
 0x1ca   : > { %v347_v23 = vpop.f32.mrb[2].mxu1 }
 0x1cb   : > { %352 = vst.msk [vmem:[%s219_s11] sm:$0xff] %vm242_vm4, %v350_v21  ;;  %v512_v24 = vpop.f32.mrb[3].mxu1 }
 0x1d2   : > { %v364_v26 = vld [vmem:[%s219_s11] sm:$0xff] }
 0x1d3   : > { %v373_v27 = vmul.f32 %v574_v25, %v364_v26 }
 0x1d5   : > { %374 = vst.msk [vmem:[%s219_s11] sm:$0xff] %vm242_vm4, %v373_v27 }
 0x1d6   : > { %588 = shalt.err (!%p585_p5)
}
 0x1d7   : > { %s589_s4 = scalar_lea.hbm %s756_s26, 128  ;;  %s593_s7 = scalar_lea.hbm %s809_s3, 256 }
 0x1d8   : > { %p590_p6 = scmp.ne.s32.totalorder %s756_s26, %s589_s4  ;;  %p594_p10 = scmp.lt.u32.totalorder %s756_s26, %s809_s3 }
 0x1d9   : > { %p595_p11 = scmp.lt.u32.totalorder %s593_s7, %s589_s4  ;;  %p597_p13 = scmp.lt.u32.totalorder %s589_s4, %s756_s26 }
 0x1da   : > { %p591_p7 = pnand %p590_p6, %p719_p4 }
 0x1db   : > { %p596_p12 = por %p595_p11, %p594_p10 }
 0x1dc   : > { %p592_p9 = pneg %p591_p7 }
 0x1dd   : > { %p598_p0 = por %p597_p13, %p596_p12 }
 0x1df   : > { %p599_p1 = pnand %p598_p0, %p592_p9 }
 0x1e1   : > { %602 = shalt.err (!%p599_p1)
}
 0x1e2   : > { %513 = dma.vmem_to_hbm [thread:$0]  (%p719_p4), %s758_s19, 128, %s756_s26, %s376_s27  }
 0x1e3 PF: > { %p519_p2 = scmp.ge.s32.totalorder %s653_s17, 2  ;;  %s402_s10 = sand.u32 1, %s633_s12  }
 0x1e4   : > { %s403_s11 = scalar_lea.sflag [#allocation4], %s402_s10 }
 0x1e5   : > { %p516_p3 = pnand %p519_p2, %p726_p8 }
 0x1e7   : > { %628 = dma.done.wait (!%p516_p3), %s403_s11, 128  }
 0x1e8   : > { %630 = vsyncadd (!%p516_p3), %s403_s11, 4294967168  ;;  %s16_s17 = sadd.s32 1, %s653_s17   ;;  %s812_s12 = smov %s637_s13 }
 0x1e9   : > { %p13_p5 = scmp.ge.s32.totalorder %s16_s17, 4   ;;  %s813_s13 = smov %s641_s14 }
 0x1ea   : > { %s814_s14 = smov %s732_s25  ;;  %s815_s15 = smov %s649_s16 }
 0x1eb   : > { %s816_s16 = smov %s818_s20  ;;  %15 = sbr.rel (!%p13_p5) target bundleno = 4 (0x4), region = 78 }
 0x1f2   :  { %408 = vsyncpa [#allocation4], 1 }
 0x1f3   :  { %410 = vsyncpa [#allocation4 + $0x1], 1 }

</bundles_post_ra>
